<compile_context>
chip_gen: v7x
topology: tpu7x:2x2x1
jax: 0.10.0
libtpu: 0.0.40
codegen_flags: <defaults>
</compile_context>

<pallas_src>
import numpy as np
import jax
import jax.numpy as jnp
from jax.experimental import pallas as pl
from jax.experimental.pallas import tpu as pltpu

KERNEL_SIZE = 9  # 3 ** 2


def _round_up(n, m):
    return ((n + m - 1) // m) * m


def _vmem_capacity_bytes():
    """Physical VMEM per TensorCore (generation-aware); conservative fallback."""
    try:
        info = pltpu.get_tpu_info()
        cap = getattr(info, "vmem_capacity_bytes", None)
        if cap:
            return int(cap)
    except Exception:
        pass
    return 64 * 1024 * 1024  # v7x per-TC size == safe lower bound for all gens


def _face_conv_demod_kernel(x_ref, w_ref, b_ref, o_ref):
    # x_ref: (K, TF)  gathered activations, faces on the 128-lane axis
    # w_ref: (O, K)   demodulated flattened weight, resident across the grid
    # b_ref: (O, 1)   bias (f32), resident
    # o_ref: (O, TF)  output tile (lane-dense: TF is a multiple of 128)
    acc = jnp.dot(w_ref[...], x_ref[...], preferred_element_type=jnp.float32)
    o_ref[...] = (acc + b_ref[...]).astype(o_ref.dtype)


def face_conv_demodulated(x, face_neighborhood, face_is_pad, pad_size,
                          weight, bias, *, compute_dtype=jnp.bfloat16,
                          max_input_block_bytes=4 * 1024 * 1024):
    C_in = x.shape[1]
    O = weight.shape[0]
    F = face_neighborhood.shape[0]
    K = KERNEL_SIZE * C_in
    out_dtype = x.dtype
    in_bytes = jnp.dtype(compute_dtype).itemsize
    out_bytes = jnp.dtype(out_dtype).itemsize

    # ---- glue (plain JAX): scatter non-pad rows into the padded buffer ------
    # NOTE: assumes count(~face_is_pad) == x.shape[0], which the PyTorch
    # boolean-mask assignment also requires.
    non_pad_idx = jnp.where(jnp.logical_not(face_is_pad), size=x.shape[0])[0]
    padded_x = jnp.zeros((pad_size, C_in), dtype=x.dtype).at[non_pad_idx].set(x)

    # ---- glue (plain JAX): neighbor gather, produced feature-major ----------
    # gathered_t[c*9 + k, f] = padded_x[face_neighborhood[f, k], c]
    gathered_t = jnp.take(padded_x.T, face_neighborhood.T, axis=1)  # (C, 9, F)
    gathered_t = gathered_t.reshape(K, F).astype(compute_dtype)     # (K, F)

    # ---- one-time weight demodulation, f32 (off the per-step path) ----------
    w32 = weight.astype(jnp.float32)
    dcoefs = jax.lax.rsqrt(
        jnp.sum(w32 * w32, axis=(1, 2, 3), keepdims=True) + 1e-8)   # (O,1,1,1)
    # flatten to (O, K) with column index c*9 + k — matches gathered_t rows
    w_flat = (w32 * dcoefs)[:, :, 0, :].reshape(O, K).astype(compute_dtype)
    b2 = bias.astype(jnp.float32).reshape(O, 1)

    # ---- face-axis tiling: VMEM-budget-derived, lane-dense (mult. of 128) ---
    vmem_cap = _vmem_capacity_bytes()
    vmem_budget = int(vmem_cap * 0.70)            # v7x ~45 MiB, v5e/v6e ~90 MiB
    resident = O * K * in_bytes + O * 4           # weight + bias stay in VMEM
    per_col = 2 * K * in_bytes + 2 * O * out_bytes  # double-buffered in + out
    tile_from_vmem = max(0, vmem_budget - resident) // per_col
    tile_from_blk = max_input_block_bytes // (K * in_bytes)  # ~4 MiB in-blocks
    tile_f = max(128, (min(tile_from_vmem, tile_from_blk) // 128) * 128)

    f_ceil = _round_up(F, 128)
    if f_ceil >= 256:
        # keep >= 2 grid steps so v7x's two TensorCores both get work on the
        # "parallel" face axis (and the pipeline has >= 2 stages everywhere).
        tile_f = min(tile_f, _round_up(pl.cdiv(f_ceil, 2), 128))
    tile_f = min(tile_f, f_ceil)

    F_pad = _round_up(F, tile_f)
    if F_pad != F:
        gathered_t = jnp.pad(gathered_t, ((0, 0), (0, F_pad - F)))

    need = 2 * K * tile_f * in_bytes + 2 * O * tile_f * out_bytes + resident
    vmem_limit = int(min(vmem_cap * 3 // 4,
                         max(32 * 1024 * 1024, need + (8 << 20))))

    cost = pl.CostEstimate(
        flops=2 * O * K * F_pad,
        transcendentals=0,
        bytes_accessed=(K * F_pad * in_bytes + O * F_pad * out_bytes
                        + O * K * in_bytes + O * 4),
    )

    out_t = pl.pallas_call(
        _face_conv_demod_kernel,
        out_shape=jax.ShapeDtypeStruct((O, F_pad), out_dtype),
        grid_spec=pltpu.PrefetchScalarGridSpec(
            num_scalar_prefetch=0,
            grid=(F_pad // tile_f,),
            in_specs=[
                pl.BlockSpec((K, tile_f), lambda i: (0, i)),   # streamed faces
                pl.BlockSpec((O, K), lambda i: (0, 0)),        # resident weight
                pl.BlockSpec((O, 1), lambda i: (0, 0)),        # resident bias
            ],
            out_specs=pl.BlockSpec((O, tile_f), lambda i: (0, i)),
        ),
        compiler_params=pltpu.CompilerParams(
            dimension_semantics=("parallel",),   # megacore split on v7x
            vmem_limit_bytes=vmem_limit,
        ),
        cost_estimate=cost,
    )(gathered_t, w_flat, b2)

    # back to the module's [F, O] layout (small: O columns).
    # TODO(synk): if the consumer can take the feature-major (O, F) layout,
    # return out_t[:, :F] directly and drop this transpose round trip.
    return out_t[:, :F].T.astype(out_dtype)


def _reference(x, face_neighborhood, face_is_pad, pad_size, weight, bias):
    """Pure-JAX transcription of the PyTorch forward (correctness check)."""
    C_in = x.shape[1]
    non_pad_idx = jnp.where(jnp.logical_not(face_is_pad), size=x.shape[0])[0]
    padded_x = jnp.zeros((pad_size, C_in), dtype=x.dtype).at[non_pad_idx].set(x)
    conv_in = padded_x[face_neighborhood]                      # [F, 9, C]
    w = weight
    dcoefs = jax.lax.rsqrt(jnp.sum(w * w, axis=(1, 2, 3)) + 1e-8)
    w = w * dcoefs[:, None, None, None]
    return jnp.einsum("fkc,ock->fo", conv_in, w[:, :, 0, :]) + bias


if __name__ == "__main__":
    key = jax.random.PRNGKey(0)
    k_w, k_b, k_x, k_nb1, k_nb2 = jax.random.split(key, 5)

    in_channels, out_channels = 4, 8
    n_faces = 40          # rows of x (non-pad faces)
    pad_size = 48         # padded face buffer size

    # deterministic parameter init (shapes from module __init__)
    weight = jax.random.normal(
        k_w, (out_channels, in_channels, 1, KERNEL_SIZE), dtype=jnp.float32)
    bias = 0.1 * jax.random.normal(k_b, (out_channels,), dtype=jnp.float32)

    # deterministic example inputs
    x = jax.random.normal(k_x, (n_faces, in_channels), dtype=jnp.float32)
    pad_flags = np.zeros((pad_size,), dtype=bool)
    pad_positions = np.linspace(0, pad_size - 1, pad_size - n_faces).astype(np.int64)
    pad_flags[pad_positions] = True            # exactly (pad_size - n_faces) pad slots
    face_is_pad = jnp.asarray(pad_flags)

    # case 1: small face count (single grid step), strict f32 compute path
    nbr_small = jax.random.randint(
        k_nb1, (n_faces, KERNEL_SIZE), 0, pad_size, dtype=jnp.int32)
    y_ref = _reference(x, nbr_small, face_is_pad, pad_size, weight, bias)
    y32 = face_conv_demodulated(x, nbr_small, face_is_pad, pad_size,
                                weight, bias, compute_dtype=jnp.float32)
    y32 = jax.block_until_ready(y32)
    np.testing.assert_allclose(np.asarray(y32), np.asarray(y_ref),
                               rtol=1e-4, atol=1e-4)

    # case 2: enough faces for a multi-step grid + padded face axis,
    # default bf16 fast path (looser tolerance for the cast operands)
    n_out_faces = 333
    nbr_big = jax.random.randint(
        k_nb2, (n_out_faces, KERNEL_SIZE), 0, pad_size, dtype=jnp.int32)
    y_ref2 = _reference(x, nbr_big, face_is_pad, pad_size, weight, bias)
    y16 = face_conv_demodulated(x, nbr_big, face_is_pad, pad_size, weight, bias)
    y16 = jax.block_until_ready(y16)
    np.testing.assert_allclose(np.asarray(y16), np.asarray(y_ref2),
                               rtol=5e-2, atol=5e-2)

    print("KERNEL_OK")
</pallas_src>

<mosaic_0001>
module attributes {stable_mosaic.version = 11 : i64} {
  func.func @_face_conv_demod_kernel(%arg0: i32, %arg1: memref<36x128xf32, #tpu.memory_space<vmem>>, %arg2: memref<8x36xf32, #tpu.memory_space<vmem>>, %arg3: memref<8x1xf32, #tpu.memory_space<vmem>>, %arg4: memref<8x128xf32, #tpu.memory_space<vmem>>) attributes {dimension_semantics = [#tpu.dimension_semantics<parallel>], iteration_bounds = array<i64: 1>, scalar_prefetch = 0 : i64, scratch_operands = 0 : i64, tpu.core_type = #tpu.core_type<tc>, window_params = [{transform_indices = @transform_0, window_bounds = array<i64: 36, 128>}, {pipeline_mode = #tpu.pipeline_mode<synchronous>, transform_indices = @transform_1, window_bounds = array<i64: 8, 36>}, {pipeline_mode = #tpu.pipeline_mode<synchronous>, transform_indices = @transform_2, window_bounds = array<i64: 8, 1>}, {transform_indices = @transform_3, window_bounds = array<i64: 8, 128>}]} {
    %c0 = arith.constant 0 : index
    %c0_0 = arith.constant 0 : index
    %0 = vector.load %arg2[%c0, %c0_0] : memref<8x36xf32, #tpu.memory_space<vmem>>, vector<8x36xf32>
    %c0_1 = arith.constant 0 : index
    %c0_2 = arith.constant 0 : index
    %1 = vector.load %arg1[%c0_1, %c0_2] : memref<36x128xf32, #tpu.memory_space<vmem>>, vector<36x128xf32>
    %cst = arith.constant dense<0.000000e+00> : vector<8x128xf32>
    %2 = tpu.matmul %0, %1, %cst {dimension_numbers = #tpu.dot_dimension_numbers<[1], [0], [0], [1], [0, 0, 1, 1], [], []>} : vector<8x36xf32>, vector<36x128xf32>, vector<8x128xf32> -> vector<8x128xf32>
    %c0_3 = arith.constant 0 : index
    %c0_4 = arith.constant 0 : index
    %3 = vector.load %arg3[%c0_3, %c0_4] : memref<8x1xf32, #tpu.memory_space<vmem>>, vector<8x1xf32>
    %4 = vector.broadcast %3 : vector<8x1xf32> to vector<8x128xf32>
    %5 = arith.addf %2, %4 : vector<8x128xf32>
    %c0_5 = arith.constant 0 : index
    %c0_6 = arith.constant 0 : index
    %6 = vector.load %arg4[%c0_5, %c0_6] : memref<8x128xf32, #tpu.memory_space<vmem>>, vector<8x128xf32>
    tpu.vector_store %arg4[%c0_5, %c0_6], %5 {strides = array<i32>} : memref<8x128xf32, #tpu.memory_space<vmem>>, vector<8x128xf32>,
    return
  }
  func.func @transform_0(%arg0: i32) -> (i32, i32) {
    %c0_i32 = arith.constant 0 : i32
    %c0_i32_0 = arith.constant 0 : i32
    return %c0_i32, %arg0 : i32, i32
  }
  func.func @transform_1(%arg0: i32) -> (i32, i32) {
    %c0_i32 = arith.constant 0 : i32
    %c0_i32_0 = arith.constant 0 : i32
    %c0_i32_1 = arith.constant 0 : i32
    return %c0_i32, %c0_i32_0 : i32, i32
  }
  func.func @transform_2(%arg0: i32) -> (i32, i32) {
    %c0_i32 = arith.constant 0 : i32
    %c0_i32_0 = arith.constant 0 : i32
    %c0_i32_1 = arith.constant 0 : i32
    return %c0_i32, %c0_i32_0 : i32, i32
  }
  func.func @transform_3(%arg0: i32) -> (i32, i32) {
    %c0_i32 = arith.constant 0 : i32
    %c0_i32_0 = arith.constant 0 : i32
    return %c0_i32, %arg0 : i32, i32
  }
}

</mosaic_0001>

<bundles_post_ra>
// kernel: tpu_custom_call.1
= control target key start
LH: loop header
LB: loop body
LE: loop exit
PB: predicated region body
PF: predicated region fallthrough
CT: control target
= control target key end

     0   :  { %8 = vsyncpa [#allocation3], 0  ;;  %s277_s0 = inlined_call_operand.hbm [shape: f32[36,128], index: 0, kind: input, shape index: {}]   ;;  %s278_s1 = inlined_call_operand.vmem [shape: f32[8,36], index: 1, kind: input, shape index: {}]   ;;  %s279_s2 = inlined_call_operand.vmem [shape: f32[8,1], index: 2, kind: input, shape index: {}]   ;;  %s280_s3 = inlined_call_operand.hbm [shape: f32[8,128], index: 3, kind: output, shape index: {}]  }
   0x1   :  { %9 = vsyncpa [#allocation4], 0  ;;  %s219_s12 = smov [#allocation2]   ;;  %s171_s16 = scalar_lea.hbm %s277_s0, 640 }
   0x2   :  { %s15_s13 = sshll.u32 %s219_s12, 4  ;;  %p172_p0 = scmp.ne.s32.totalorder %s277_s0, %s171_s16  ;;  %s16_s13 = int_to_ptr.vmem [resolvable:$true] %s15_s13 }
   0x3   :  { %p175_p1 = scmp.lt.u32.totalorder %s171_s16, %s277_s0 }
   0x5   :  { %p177_p2 = pnand %p175_p1, %p172_p0 }
   0x7   :  { %180 = shalt.err (!%p177_p2)
}
   0x8   :  { %s181_s21 = scalar_lea.vmem %s16_s13, 640  ;;  %p186_p4 = scmp.lt.s32.totalorder %s16_s13, %s16_s13 }
   0x9   :  { %p182_p3 = scmp.ne.s32.totalorder %s16_s13, %s181_s21  ;;  %p187_p5 = scmp.lt.s32.totalorder %s181_s21, %s181_s21 }
   0xb   :  { %p188_p6 = por %p187_p5, %p186_p4 }
   0xd   :  { %p189_p7 = pnand %p188_p6, %p182_p3 }
   0xf   :  { %192 = shalt.err (!%p189_p7)
}
  0x10   :  { %s220_s22 = smov 128   ;;  %s221_s23 = smov 8  }
  0x11   :  { %21 = dma.hbm_to_vmem [thread:$0]  %s277_s0, 640, %s16_s13, [#allocation3], %s220_s22, %s220_s22, %s221_s23  }
  0x12   :  { %215 = dma.done.wait [#allocation3], 640  }
  0x13   :  { %216 = vsyncadd [#allocation3], 4294966656  ;;  %v222_v0 = vmov 0.0|0.0   ;;  %vm223_vm0 = vmmov 0   ;;  %v224_v1 = vmov 0.0   ;;  %v225_v2 = vmov 0  }
  0x14   :  { %156 = vmatprep.subr.bf16.mxu0 %v222_v0  ;;  %153 = vmatprep.mubr.msk.f32.mxu0 %vm223_vm0, %v224_v1  ;;  %v30_v3 = vld [vmem:[#allocation2] sm:$0xff]  ;;  %v31_v4 = vld [vmem:[#allocation2 + $0x8] sm:$0xff]  ;;  %v32_v5 = vld [vmem:[#allocation2 + $0x10] sm:$0xff]  ;;  %vm45_vm1 = vcmask 1043456   ;;  %vm41_vm2 = vcmask 293888   ;;  %s226_s29 = smov [#allocation5]  }
  0x15   :  { %170 = vset.pattern.permute.xlu0 %v225_v2  ;;  %v157_v6 = vpack.c.bf16 %v31_v4, %v30_v3  ;;  %v33_v7 = vld [vmem:[#allocation2 + $0x18] sm:$0xff]  ;;  %v35_v8 = vld [vmem:[%s279_s2] sm:$0xff]  ;;  %s126_s30 = sshll.u32 %s226_s29, 4  ;;  %s127_s30 = int_to_ptr.vmem [resolvable:$true] %s126_s30 }
  0x16   :  { %v160_v9 = vpack.c.bf16 %v33_v7, %v32_v5  ;;  %38 = vperm.xlu0 %170, %v35_v8   ;;  %v34_v10 = vld [vmem:[#allocation2 + $0x20] sm:$0xf]  ;;  %s193_s2 = scalar_lea.vmem %s127_s30, 128  ;;  %p198_p9 = scmp.lt.s32.totalorder %s127_s30, %s127_s30 }
  0x17   :  { %158 = vmatpush3.bf16.msra.mxu0 %v157_v6  ;;  %v29_v11 = vld [vmem:[%s278_s1] sm:$0xff]  ;;  %p194_p8 = scmp.ne.s32.totalorder %s127_s30, %s193_s2  ;;  %p199_p10 = scmp.lt.s32.totalorder %s193_s2, %s193_s2 }
  0x18   :  { %159 = vmatprep.subr.bf16.mxu0 %v222_v0 }
  0x19   :  { %p200_p11 = por %p199_p10, %p198_p9 }
  0x1b   :  { %161 = vmatpush3.bf16.msra.mxu0 %v160_v9  ;;  %p201_p12 = pnand %p200_p11, %p194_p8 }
  0x1c   :  { %151 = vmatprep.subr.mxu0 %v224_v1 }
  0x1f   :  { %152 = vmatpush3.msk.msra.mxu0 %vm45_vm1, %v34_v10 }
  0x20   :  { %154 = vmatmul.mubr.msk.f32.vlgmr.msra.gmra.mrb[0].mxu0 %vm41_vm2, %v29_v11 }
  0x95   :  { %v39_v12 = vpop.permute.xlu0 %38 }
  0xf3   :  { %v115_v13 = vpop.f32.mrb[0].mxu0 }
  0xf4   :  { %v116_v14 = vadd.f32 %v115_v13, %v39_v12  ;;  %v155_v15 = vpop.f32.mrb[1].mxu0 }
  0xf6   :  { %119 = vst [vmem:[#allocation5] sm:$0xff] %v116_v14 }
  0xf7   :  { %204 = shalt.err (!%p201_p12)
}
  0xf8   :  { %s205_s5 = scalar_lea.hbm %s280_s3, 128 }
  0xf9   :  { %p206_p13 = scmp.ne.s32.totalorder %s280_s3, %s205_s5  ;;  %p209_p0 = scmp.lt.u32.totalorder %s205_s5, %s280_s3 }
  0xfb   :  { %p211_p1 = pnand %p209_p0, %p206_p13 }
  0xfd   :  { %214 = shalt.err (!%p211_p1)
}
  0xfe   :  { %129 = dma.vmem_to_hbm [thread:$0]  %s127_s30, 128, %s280_s3, [#allocation4]  }
  0xff   :  { %217 = dma.done.wait [#allocation4], 128  }
 0x100   :  { %218 = vsyncadd [#allocation4], 4294967168 }
 0x101   :  { %133 = vsyncpa [#allocation3], 1 }
 0x102   :  { %134 = vsyncpa [#allocation4], 1 }

</bundles_post_ra>
